<compile_context>
chip_gen: v7x
topology: tpu7x:2x2x1
jax: 0.10.0
libtpu: 0.0.40
codegen_flags: <defaults>
</compile_context>

<pallas_src>
import functools

import jax
import jax.numpy as jnp
import numpy as np
from jax.experimental import pallas as pl
from jax.experimental.pallas import tpu as pltpu


# ---------------------------------------------------------------------------
# Trace-time resize weights: PIL / torchvision 'bilinear' with antialias=True
# ---------------------------------------------------------------------------
def _resize_weights(in_size: int, out_size: int) -> np.ndarray:
    """(out_size, in_size) weight matrix for antialiased bilinear resampling."""
    scale = in_size / out_size
    filterscale = max(scale, 1.0)
    support = filterscale            # triangle filter support = 1.0, scaled
    inv = 1.0 / filterscale
    mat = np.zeros((out_size, in_size), dtype=np.float64)
    for j in range(out_size):
        center = (j + 0.5) * scale
        xmin = max(int(center - support + 0.5), 0)
        xmax = min(int(center + support + 0.5), in_size)
        xs = np.arange(xmin, xmax, dtype=np.float64)
        ws = np.maximum(0.0, 1.0 - np.abs((xs - center + 0.5) * inv))
        total = ws.sum()
        if total > 0.0:
            ws /= total
        mat[j, xmin:xmax] = ws
    return mat.astype(np.float32)


# ---------------------------------------------------------------------------
# h <= w : center-crop the width.  The crop lives in the DMA: only the cropped
# window ever crosses HBM -> VMEM.
# ---------------------------------------------------------------------------
def _crop_dma_kernel(x_hbm, o_ref, sem, *, pad, out_w):
    ci = pl.program_id(0)
    # Pull exactly the cropped (1, h, out_w) window of channel `ci` from HBM
    # into the output VMEM block; Pallas writes the block back to HBM.
    cp = pltpu.make_async_copy(
        x_hbm.at[pl.ds(ci, 1), :, pl.ds(pad, out_w)], o_ref, sem)
    cp.start()
    cp.wait()


def _center_crop_width(image: jax.Array) -> jax.Array:
    c, h, w = image.shape          # h <= w
    if h == w:
        return image
    pad = (w - h) // 2
    out_w = h
    itemsize = jnp.dtype(image.dtype).itemsize

    # Lane-sparse outputs, or per-channel windows too big for one resident
    # VMEM block: XLA's (fusible) slice is already a roofline copy, so a Pallas
    # round trip only adds an un-fusible HBM pass (perf review #8).
    # TODO(synk): row-tile the DMA-crop kernel if >8 MiB/channel ever matters.
    if out_w < 256 or h * out_w * itemsize > (8 << 20):
        return jax.lax.slice(image, (0, 0, pad), (c, h, pad + out_w))

    kernel = functools.partial(_crop_dma_kernel, pad=pad, out_w=out_w)
    return pl.pallas_call(
        kernel,
        out_shape=jax.ShapeDtypeStruct((c, h, out_w), image.dtype),
        grid=(c,),
        in_specs=[pl.BlockSpec(memory_space=pl.ANY)],     # stay in HBM; manual DMA
        out_specs=pl.BlockSpec((1, h, out_w), lambda ci: (ci, 0, 0)),
        scratch_shapes=[pltpu.SemaphoreType.DMA],
        compiler_params=pltpu.CompilerParams(
            dimension_semantics=("parallel",)),
        # Only the cropped bytes move now: read out_w cols + write out_w cols.
        cost_estimate=pl.CostEstimate(
            flops=0, transcendentals=0,
            bytes_accessed=int(2 * c * h * out_w * itemsize)),
    )(image)


# ---------------------------------------------------------------------------
# h > w : zero-pad sides + antialiased bilinear resize to (w, w)
#   out[c] = A_rows @ image[c] @ A_cols_eff^T   (two MXU matmuls, bf16 operands,
#   f32 accumulation; zero padding folded into A_cols_eff by dropping the
#   weight columns over the pad -- the per-row normalisation already includes
#   them, exactly like pad-then-resize).
# ---------------------------------------------------------------------------
def _pad_resize_kernel(ar_ref, act_ref, x_ref, o_ref):
    # ar_ref: (tm, h) bf16 row-resize tile; act_ref: (w_in, w_out) bf16 = A_cols_eff^T
    # x_ref: (c, h, w_in) image (resident); o_ref: (c, tm, w_out).
    c, tm, w_out = o_ref.shape
    ar = ar_ref[...]
    act = act_ref[...]
    # First matmul per channel (c is tiny, unrolled): (tm,h) @ (h,w_in) -> f32.
    tmps = [jnp.dot(ar, x_ref[ci].astype(jnp.bfloat16),
                    preferred_element_type=jnp.float32) for ci in range(c)]
    if tm % 8 == 0:
        # Channel-batched second matmul: one (c*tm, w_in) @ (w_in, w_out) MXU pass
        # instead of c underfilled dots (perf review: MXU fill + drain latency).
        tmp = jnp.concatenate(tmps, axis=0).astype(jnp.bfloat16)
        out = jnp.dot(tmp, act, preferred_element_type=jnp.float32)
        o_ref[...] = out.reshape(c, tm, w_out).astype(o_ref.dtype)
    else:
        # Odd row-tile (tm not sublane-aligned): keep per-channel dots so no
        # sublane-splitting reshape is needed.
        for ci in range(c):
            out = jnp.dot(tmps[ci].astype(jnp.bfloat16), act,
                          preferred_element_type=jnp.float32)
            o_ref[ci] = out.astype(o_ref.dtype)


def _pad_and_resize(image: jax.Array) -> jax.Array:
    c, h, w = image.shape          # h > w
    pad = (h - w) // 2
    w_padded = w + 2 * pad
    itemsize = jnp.dtype(image.dtype).itemsize

    # bf16 weights: MXU peak is bf16 anyway; halves weight DMA + VMEM.
    a_rows = jnp.asarray(_resize_weights(h, w), dtype=jnp.bfloat16)          # (w, h)
    a_cols = _resize_weights(w_padded, w)                                    # (w, w_padded)
    a_cols_t = jnp.asarray(np.ascontiguousarray(a_cols[:, pad:pad + w].T),
                           dtype=jnp.bfloat16)                               # (w, w)

    # Generation-aware output row tile (v5e/v6e: 128 MiB VMEM -> 512; v7x: 64 MiB -> 256).
    try:
        vmem_cap = pltpu.get_tpu_info().vmem_capacity_bytes
    except Exception:
        vmem_cap = 64 << 20
    tm_cap = 512 if vmem_cap >= (100 << 20) else 256
    tm = w if w <= tm_cap else tm_cap
    n_row = pl.cdiv(w, tm)
    # NOTE: when w % tm != 0 the last A_rows block reads past (w, h); this is
    # safe only because the matching output rows are OOB-masked on store.

    # Double-buffered per-step VMEM footprint (A_rows tile + A_cols^T + image + out).
    est = 2 * (tm * h * 2 + w * w * 2 + c * h * w * itemsize + c * tm * w * itemsize)
    if est > (56 << 20):
        # TODO(synk): K-tile over h with an f32 accumulator for very large images
        # instead of keeping the whole channel-batched image resident.
        out = jnp.einsum("oh,chw,wn->con",
                         a_rows.astype(jnp.float32),
                         jnp.asarray(image, jnp.float32),
                         a_cols_t.astype(jnp.float32))
        return out.astype(image.dtype)

    flops = 2 * c * w * w * (h + w)
    bytes_accessed = int(a_rows.size * 2 + a_cols_t.size * 2
                         + (image.size + c * w * w) * itemsize)
    vmem_limit = int(min(max(est + (8 << 20), 32 << 20), 100 << 20))

    # TODO(synk): integer image dtypes would need round+clamp to match
    # torchvision's uint8 resize exactly; float dtypes match to bf16-MXU accuracy.
    return pl.pallas_call(
        _pad_resize_kernel,
        out_shape=jax.ShapeDtypeStruct((c, w, w), image.dtype),
        # Single row-tile axis: channels are folded into the block, so megacore
        # (v7x) shards rows evenly instead of splitting c=3 2:1.
        grid=(n_row,),
        in_specs=[
            pl.BlockSpec((tm, h), lambda r: (r, 0)),        # A_rows row tile
            pl.BlockSpec((w, w), lambda r: (0, 0)),         # A_cols_eff^T (resident)
            pl.BlockSpec((c, h, w), lambda r: (0, 0, 0)),   # image (resident)
        ],
        out_specs=pl.BlockSpec((c, tm, w), lambda r: (0, r, 0)),
        compiler_params=pltpu.CompilerParams(
            dimension_semantics=("parallel",),
            vmem_limit_bytes=vmem_limit),
        cost_estimate=pl.CostEstimate(flops=flops, transcendentals=0,
                                      bytes_accessed=bytes_accessed),
    )(a_rows, a_cols_t, image)


# ---------------------------------------------------------------------------
# Public wrapper (mirrors CenterCropOrPadSides.forward)
# ---------------------------------------------------------------------------
def center_crop_or_pad_sides(image: jax.Array) -> jax.Array:
    """Pallas implementation of CenterCropOrPadSides.forward for a CHW image."""
    if image.ndim != 3:
        raise ValueError(f"expected a CHW image, got shape {image.shape}")
    _, h, w = image.shape
    if h > w:
        return _pad_and_resize(image)
    return _center_crop_width(image)


if __name__ == "__main__":
    key = jax.random.PRNGKey(0)
    k1, k2, k3 = jax.random.split(key, 3)

    # ---- h > w : zero-pad sides + antialiased bilinear resize -> (c, w, w)
    tall = jax.random.normal(k1, (3, 40, 32), dtype=jnp.float32)
    out_tall = jax.block_until_ready(center_crop_or_pad_sides(tall))
    assert out_tall.shape == (3, 32, 32) and out_tall.dtype == tall.dtype

    pad = (40 - 32) // 2
    a_r = _resize_weights(40, 32).astype(np.float64)            # (32, 40)
    a_c = _resize_weights(32 + 2 * pad, 32).astype(np.float64)  # (32, 40)
    padded = np.pad(np.asarray(tall, dtype=np.float64), ((0, 0), (0, 0), (pad, pad)))
    ref_tall = np.einsum("oi,cij,pj->cop", a_r, padded, a_c)
    # bf16 MXU operands with f32 accumulation -> ~1e-2-level agreement expected.
    assert np.allclose(np.asarray(out_tall, dtype=np.float64), ref_tall,
                       atol=5e-2, rtol=5e-2), "pad+resize mismatch"

    # ---- h <= w, wide enough to take the Pallas DMA-crop path (pad in the DMA)
    wide = jax.random.normal(k2, (3, 256, 384), dtype=jnp.float32)
    out_wide = jax.block_until_ready(center_crop_or_pad_sides(wide))
    pad_w = (384 - 256) // 2
    assert out_wide.shape == (3, 256, 256) and out_wide.dtype == wide.dtype
    assert jnp.array_equal(out_wide, wide[:, :, pad_w:pad_w + 256]), "crop mismatch"

    # ---- h <= w, tiny image -> fusible XLA slice fallback
    small = jax.random.normal(k3, (3, 16, 32), dtype=jnp.float32)
    out_small = jax.block_until_ready(center_crop_or_pad_sides(small))
    assert out_small.shape == (3, 16, 16)
    assert jnp.array_equal(out_small, small[:, :, 8:24]), "small-crop mismatch"

    print("KERNEL_OK")
</pallas_src>

<mosaic_0001>
module attributes {stable_mosaic.version = 11 : i64} {
  func.func @_pad_resize_kernel(%arg0: i32, %arg1: memref<32x40xbf16, #tpu.memory_space<vmem>>, %arg2: memref<32x32xbf16, #tpu.memory_space<vmem>>, %arg3: memref<3x40x32xf32, #tpu.memory_space<vmem>>, %arg4: memref<3x32x32xf32, #tpu.memory_space<vmem>>) attributes {dimension_semantics = [#tpu.dimension_semantics<parallel>], iteration_bounds = array<i64: 1>, scalar_prefetch = 0 : i64, scratch_operands = 0 : i64, tpu.core_type = #tpu.core_type<tc>, window_params = [{transform_indices = @transform_0, window_bounds = array<i64: 32, 40>}, {pipeline_mode = #tpu.pipeline_mode<synchronous>, transform_indices = @transform_1, window_bounds = array<i64: 32, 32>}, {pipeline_mode = #tpu.pipeline_mode<synchronous>, transform_indices = @transform_2, window_bounds = array<i64: 3, 40, 32>}, {transform_indices = @transform_3, window_bounds = array<i64: 3, 32, 32>}]} {
    %c0 = arith.constant 0 : index
    %c0_0 = arith.constant 0 : index
    %0 = vector.load %arg1[%c0, %c0_0] : memref<32x40xbf16, #tpu.memory_space<vmem>>, vector<32x40xbf16>
    %c0_1 = arith.constant 0 : index
    %c0_2 = arith.constant 0 : index
    %1 = vector.load %arg2[%c0_1, %c0_2] : memref<32x32xbf16, #tpu.memory_space<vmem>>, vector<32x32xbf16>
    %c0_3 = arith.constant 0 : index
    %c0_4 = arith.constant 0 : index
    %c0_5 = arith.constant 0 : index
    %2 = vector.load %arg3[%c0_3, %c0_4, %c0_5] : memref<3x40x32xf32, #tpu.memory_space<vmem>>, vector<1x40x32xf32>
    %3 = vector.shape_cast %2 : vector<1x40x32xf32> to vector<40x32xf32>
    %4 = arith.truncf %3 : vector<40x32xf32> to vector<40x32xbf16>
    %cst = arith.constant dense<0.000000e+00> : vector<32x32xf32>
    %5 = tpu.matmul %0, %4, %cst {dimension_numbers = #tpu.dot_dimension_numbers<[1], [0], [0], [1], [0, 0, 1, 1], [], []>} : vector<32x40xbf16>, vector<40x32xbf16>, vector<32x32xf32> -> vector<32x32xf32>
    %c1 = arith.constant 1 : index
    %c0_6 = arith.constant 0 : index
    %c0_7 = arith.constant 0 : index
    %6 = vector.load %arg3[%c1, %c0_6, %c0_7] : memref<3x40x32xf32, #tpu.memory_space<vmem>>, vector<1x40x32xf32>
    %7 = vector.shape_cast %6 : vector<1x40x32xf32> to vector<40x32xf32>
    %8 = arith.truncf %7 : vector<40x32xf32> to vector<40x32xbf16>
    %cst_8 = arith.constant dense<0.000000e+00> : vector<32x32xf32>
    %9 = tpu.matmul %0, %8, %cst_8 {dimension_numbers = #tpu.dot_dimension_numbers<[1], [0], [0], [1], [0, 0, 1, 1], [], []>} : vector<32x40xbf16>, vector<40x32xbf16>, vector<32x32xf32> -> vector<32x32xf32>
    %c2 = arith.constant 2 : index
    %c0_9 = arith.constant 0 : index
    %c0_10 = arith.constant 0 : index
    %10 = vector.load %arg3[%c2, %c0_9, %c0_10] : memref<3x40x32xf32, #tpu.memory_space<vmem>>, vector<1x40x32xf32>
    %11 = vector.shape_cast %10 : vector<1x40x32xf32> to vector<40x32xf32>
    %12 = arith.truncf %11 : vector<40x32xf32> to vector<40x32xbf16>
    %cst_11 = arith.constant dense<0.000000e+00> : vector<32x32xf32>
    %13 = tpu.matmul %0, %12, %cst_11 {dimension_numbers = #tpu.dot_dimension_numbers<[1], [0], [0], [1], [0, 0, 1, 1], [], []>} : vector<32x40xbf16>, vector<40x32xbf16>, vector<32x32xf32> -> vector<32x32xf32>
    %14 = tpu.concatenate %5, %9, %13 in 0 : vector<32x32xf32>, vector<32x32xf32>, vector<32x32xf32> -> vector<96x32xf32>
    %15 = arith.truncf %14 : vector<96x32xf32> to vector<96x32xbf16>
    %cst_12 = arith.constant dense<0.000000e+00> : vector<96x32xf32>
    %16 = tpu.matmul %15, %1, %cst_12 {dimension_numbers = #tpu.dot_dimension_numbers<[1], [0], [0], [1], [0, 0, 1, 1], [], []>} : vector<96x32xbf16>, vector<32x32xbf16>, vector<96x32xf32> -> vector<96x32xf32>
    %17 = vector.shape_cast %16 : vector<96x32xf32> to vector<3x32x32xf32>
    %c0_13 = arith.constant 0 : index
    %c0_14 = arith.constant 0 : index
    %c0_15 = arith.constant 0 : index
    %18 = vector.load %arg4[%c0_13, %c0_14, %c0_15] : memref<3x32x32xf32, #tpu.memory_space<vmem>>, vector<3x32x32xf32>
    tpu.vector_store %arg4[%c0_13, %c0_14, %c0_15], %17 {strides = array<i32>} : memref<3x32x32xf32, #tpu.memory_space<vmem>>, vector<3x32x32xf32>,
    return
  }
  func.func @transform_0(%arg0: i32) -> (i32, i32) {
    %c0_i32 = arith.constant 0 : i32
    %c0_i32_0 = arith.constant 0 : i32
    return %arg0, %c0_i32 : i32, i32
  }
  func.func @transform_1(%arg0: i32) -> (i32, i32) {
    %c0_i32 = arith.constant 0 : i32
    %c0_i32_0 = arith.constant 0 : i32
    %c0_i32_1 = arith.constant 0 : i32
    return %c0_i32, %c0_i32_0 : i32, i32
  }
  func.func @transform_2(%arg0: i32) -> (i32, i32, i32) {
    %c0_i32 = arith.constant 0 : i32
    %c0_i32_0 = arith.constant 0 : i32
    %c0_i32_1 = arith.constant 0 : i32
    %c0_i32_2 = arith.constant 0 : i32
    return %c0_i32, %c0_i32_0, %c0_i32_1 : i32, i32, i32
  }
  func.func @transform_3(%arg0: i32) -> (i32, i32, i32) {
    %c0_i32 = arith.constant 0 : i32
    %c0_i32_0 = arith.constant 0 : i32
    %c0_i32_1 = arith.constant 0 : i32
    return %c0_i32, %arg0, %c0_i32_0 : i32, i32, i32
  }
}

</mosaic_0001>

<bundles_post_ra>
// kernel: tpu_custom_call.1
= control target key start
LH: loop header
LB: loop body
LE: loop exit
PB: predicated region body
PF: predicated region fallthrough
CT: control target
= control target key end

     0   :  { %vm42_vm0 = vcmask 326656   ;;  %vm49_vm1 = vcmask 1043456   ;;  %s621_s0 = inlined_call_operand.vmem [shape: bf16[32,40], index: 0, kind: input, shape index: {}]   ;;  %s622_s1 = inlined_call_operand.vmem [shape: bf16[32,32], index: 1, kind: input, shape index: {}]   ;;  %s623_s2 = inlined_call_operand.vmem [shape: f32[3,40,32], index: 2, kind: input, shape index: {}]   ;;  %s624_s3 = inlined_call_operand.hbm [shape: f32[3,32,32], index: 3, kind: output, shape index: {}]  }
   0x1   :  { %v24_v0 = vld [vmem:[%s623_s2] sm:$0xff]  ;;  %v25_v1 = vld [vmem:[%s623_s2 + $0x8] sm:$0xff]  ;;  %v26_v2 = vld [vmem:[%s623_s2 + $0x10] sm:$0xff] }
   0x2   :  { %v29_v3 = vpack.c.bf16 %v25_v1, %v24_v0  ;;  %v27_v4 = vld [vmem:[%s623_s2 + $0x18] sm:$0xff]  ;;  %v374_v5 = vld [vmem:[%s623_s2 + $0x28] sm:$0xff]  ;;  %v375_v6 = vld [vmem:[%s623_s2 + $0x30] sm:$0xff] }
   0x3   :  { %v30_v7 = vpack.c.bf16 %v27_v4, %v26_v2  ;;  %v108_v8 = vpack.c.bf16 %v375_v6, %v374_v5  ;;  %v28_v9 = vld [vmem:[%s623_s2 + $0x20] sm:$0xff]  ;;  %v376_v10 = vld [vmem:[%s623_s2 + $0x38] sm:$0xff]  ;;  %v378_v15 = vld [vmem:[%s623_s2 + $0x48] sm:$0xff] }
   0x4   :  { %v377_v11 = vld [vmem:[%s623_s2 + $0x40] sm:$0xff]  ;;  %419 = vmatprep.subr.bf16.mxu0 %v29_v3  ;;  %v31_v14 = vpack.c.bf16 %v28_v9, %v28_v9  ;;  %v110_v16 = vpack.c.bf16 %v378_v15, %v378_v15  ;;  %v381_v17 = vld [vmem:[%s623_s2 + $0x50] sm:$0xff]  ;;  %v382_v18 = vld [vmem:[%s623_s2 + $0x58] sm:$0xff] }
   0x5   :  { %v109_v12 = vpack.c.bf16 %v377_v11, %v376_v10  ;;  %v471_v13 = vld [vmem:[%s621_s0] sm:$0xff]   ;;  %420 = vmatpush3.bf16.msra.mxu0 %v29_v3  ;;  %429 = vmatprep.subr.bf16.mxu1 %v108_v8  ;;  %v169_v20 = vpack.c.bf16 %v382_v18, %v381_v17 }
   0x6   :  { %421 = vmatprep.subr.bf16.mxu0 %v30_v7  ;;  %430 = vmatpush3.bf16.msra.mxu1 %v108_v8  ;;  %v51_v19 = vsel %vm49_vm1, %v31_v14, 0 }
   0x7   :  { %431 = vmatprep.subr.bf16.mxu1 %v109_v12  ;;  %425 = vmatprep.mubr.msk.bf16.mxu0 %vm42_vm0, %v471_v13 }
   0x8   :  { %435 = vmatprep.mubr.msk.bf16.mxu1 %vm42_vm0, %v471_v13 }
   0x9   :  { %422 = vmatpush3.bf16.msra.mxu0 %v30_v7 }
   0xa   :  { %465 = vmatprep.subr.msk.bf16.mxu0 %vm49_vm1, %v31_v14  ;;  %432 = vmatpush3.bf16.msra.mxu1 %v109_v12 }
   0xb   :  { %8 = vsyncpa [#allocation3], 0  ;;  %466 = vmatprep.subr.msk.bf16.mxu1 %vm49_vm1, %v110_v16  ;;  %v112_v21 = vsel %vm49_vm1, %v110_v16, 0  ;;  %v383_v22 = vld [vmem:[%s623_s2 + $0x60] sm:$0xff]  ;;  %v384_v23 = vld [vmem:[%s623_s2 + $0x68] sm:$0xff]  ;;  %vm242_vm2 = vcmask 261120  }
   0xc   :  { %v473_v24 = vld [vmem:[%s622_s1] sm:$0xff]   ;;  %v472_v25 = vld [vmem:[%s621_s0 + $0x8] sm:$0xff]   ;;  %v170_v26 = vpack.c.bf16 %v384_v23, %v383_v22  ;;  %v385_v27 = vld [vmem:[%s623_s2 + $0x70] sm:$0xff] }
   0xd   :  { %424 = vmatpush3.bf16.msra.mxu0 %v51_v19  ;;  %v171_v28 = vpack.c.bf16 %v385_v27, %v385_v27  ;;  %v474_v30 = vld [vmem:[%s622_s1 + $0x8] sm:$0xff]   ;;  %s499_s1 = smov [#allocation2]  }
   0xe   :  { %439 = vmatprep.subr.bf16.mxu0 %v169_v20  ;;  %434 = vmatpush3.bf16.msra.mxu1 %v112_v21  ;;  %s359_s21 = sshll.u32 %s499_s1, 4  ;;  %s360_s21 = int_to_ptr.vmem [resolvable:$true] %s359_s21 }
   0xf   :  { %449 = vmatprep.subr.bf16.mxu1 %v473_v24  ;;  %v173_v29 = vsel %vm49_vm1, %v171_v28, 0  ;;  %s475_s22 = scalar_lea.vmem %s360_s21, 1536  ;;  %p480_p1 = scmp.lt.s32.totalorder %s360_s21, %s360_s21 }
  0x10   :  { %426 = vmatmul.mubr.msk.bf16.vlgmr.msra.gmra.mrb[0].mxu0 %vm42_vm0, %v472_v25  ;;  %p476_p0 = scmp.ne.s32.totalorder %s360_s21, %s475_s22  ;;  %p481_p2 = scmp.lt.s32.totalorder %s475_s22, %s475_s22 }
  0x11   :  { %440 = vmatpush3.bf16.msra.mxu0 %v169_v20  ;;  %436 = vmatmul.mubr.msk.bf16.vlgmr.msra.gmra.mrb[0].mxu1 %vm42_vm0, %v472_v25 }
  0x12   :  { %441 = vmatprep.subr.bf16.mxu0 %v170_v26  ;;  %445 = vmatprep.mubr.msk.bf16.mxu0 %vm42_vm0, %v471_v13  ;;  %p482_p3 = por %p481_p2, %p480_p1 }
  0x13   :  { %450 = vmatpush3.bf16.msra.mxu1 %v473_v24 }
  0x14   :  { %451 = vmatprep.subr.bf16.mxu1 %v474_v30  ;;  %p483_p4 = pnand %p482_p3, %p476_p0 }
  0x15   :  { %442 = vmatpush3.bf16.msra.mxu0 %v170_v26 }
  0x16   :  { %467 = vmatprep.subr.msk.bf16.mxu0 %vm49_vm1, %v171_v28 }
  0x17   :  { %452 = vmatpush3.bf16.msra.mxu1 %v474_v30 }
  0x19   :  { %444 = vmatpush3.bf16.msra.mxu0 %v173_v29 }
  0x1c   :  { %446 = vmatmul.mubr.msk.bf16.vlgmr.msra.gmra.mrb[4].mxu0 %vm42_vm0, %v472_v25 }
  0xe3   :  { %v427_v31 = vpop.f32.mrb[0].mxu0 }
  0xe4   :  { %v87_v32 = vpop.f32.mrb[1].mxu0  ;;  %v437_v33 = vpop.f32.mrb[0].mxu1 }
  0xe5   :  { %v428_v34 = vpop.f32.mrb[2].mxu0  ;;  %v148_v35 = vpop.f32.mrb[1].mxu1 }
  0xe6   :  { %v225_v36 = vpack.c.bf16 %v428_v34, %v427_v31  ;;  %v90_v37 = vpop.f32.mrb[3].mxu0  ;;  %v438_v38 = vpop.f32.mrb[2].mxu1 }
  0xe7   :  { %v224_v39 = vpack.c.bf16 %v90_v37, %v87_v32  ;;  %v227_v40 = vpack.c.bf16 %v438_v38, %v437_v33  ;;  %v151_v41 = vpop.f32.mrb[3].mxu1 }
  0xe8   :  { %v226_v42 = vpack.c.bf16 %v151_v41, %v148_v35 }
  0xe9   :  { %453 = vmatprep.mubr.msk.bf16.mxu1 %vm242_vm2, %v224_v39 }
  0xea   :  { %454 = vmatmul.mubr.msk.bf16.vlgmr.msra.gmra.mrb[4].mxu1 %vm242_vm2, %v225_v36 }
  0xeb   :  { %457 = vmatprep.mubr.msk.bf16.mxu1 %vm242_vm2, %v226_v42 }
  0xef   :  { %v447_v43 = vpop.f32.mrb[4].mxu0 }
  0xf0   :  { %v209_v44 = vpop.f32.mrb[5].mxu0 }
  0xf1   :  { %v448_v45 = vpop.f32.mrb[6].mxu0 }
  0xf2   :  { %v229_v46 = vpack.c.bf16 %v448_v45, %v447_v43  ;;  %458 = vmatmul.mubr.msk.bf16.gmra.mrb[8].mxu1 %vm242_vm2, %v227_v40  ;;  %v212_v47 = vpop.f32.mrb[7].mxu0 }
  0xf3   :  { %v228_v48 = vpack.c.bf16 %v212_v47, %v209_v44 }
  0xf5   :  { %461 = vmatprep.mubr.msk.bf16.mxu1 %vm242_vm2, %v228_v48 }
  0xfa   :  { %462 = vmatmul.mubr.msk.bf16.gmra.mrb[12].mxu1 %vm242_vm2, %v229_v46 }
 0x1bd   :  { %v455_v49 = vpop.f32.mrb[4].mxu1 }
 0x1be   :  { %344 = vst.msk [vmem:[#allocation2 + $0x10] sm:$0xff] %vm242_vm2, %v455_v49  ;;  %v295_v50 = vpop.f32.mrb[5].mxu1 }
 0x1bf   :  { %342 = vst.msk [vmem:[#allocation2] sm:$0xff] %vm242_vm2, %v295_v50  ;;  %v456_v51 = vpop.f32.mrb[6].mxu1 }
 0x1c0   :  { %345 = vst.msk [vmem:[#allocation2 + $0x18] sm:$0xff] %vm242_vm2, %v456_v51  ;;  %v298_v52 = vpop.f32.mrb[7].mxu1 }
 0x1c1   :  { %343 = vst.msk [vmem:[#allocation2 + $0x8] sm:$0xff] %vm242_vm2, %v298_v52 }
 0x1c5   :  { %v459_v53 = vpop.f32.mrb[8].mxu1 }
 0x1c6   :  { %348 = vst.msk [vmem:[#allocation2 + $0x30] sm:$0xff] %vm242_vm2, %v459_v53  ;;  %v311_v54 = vpop.f32.mrb[9].mxu1 }
 0x1c7   :  { %346 = vst.msk [vmem:[#allocation2 + $0x20] sm:$0xff] %vm242_vm2, %v311_v54  ;;  %v460_v55 = vpop.f32.mrb[10].mxu1 }
 0x1c8   :  { %349 = vst.msk [vmem:[#allocation2 + $0x38] sm:$0xff] %vm242_vm2, %v460_v55  ;;  %v314_v56 = vpop.f32.mrb[11].mxu1 }
 0x1c9   :  { %347 = vst.msk [vmem:[#allocation2 + $0x28] sm:$0xff] %vm242_vm2, %v314_v56 }
 0x1cd   :  { %v463_v57 = vpop.f32.mrb[12].mxu1 }
 0x1ce   :  { %352 = vst.msk [vmem:[#allocation2 + $0x50] sm:$0xff] %vm242_vm2, %v463_v57  ;;  %v327_v58 = vpop.f32.mrb[13].mxu1 }
 0x1cf   :  { %350 = vst.msk [vmem:[#allocation2 + $0x40] sm:$0xff] %vm242_vm2, %v327_v58  ;;  %v464_v59 = vpop.f32.mrb[14].mxu1 }
 0x1d0   :  { %353 = vst.msk [vmem:[#allocation2 + $0x58] sm:$0xff] %vm242_vm2, %v464_v59  ;;  %v330_v60 = vpop.f32.mrb[15].mxu1 }
 0x1d1   :  { %351 = vst.msk [vmem:[#allocation2 + $0x48] sm:$0xff] %vm242_vm2, %v330_v60 }
 0x1d2   :  { %486 = shalt.err (!%p483_p4)
}
 0x1d3   :  { %s487_s25 = scalar_lea.hbm %s624_s3, 1536 }
 0x1d4   :  { %p488_p5 = scmp.ne.s32.totalorder %s624_s3, %s487_s25  ;;  %p491_p6 = scmp.lt.u32.totalorder %s487_s25, %s624_s3 }
 0x1d6   :  { %p493_p7 = pnand %p491_p6, %p488_p5 }
 0x1d8   :  { %496 = shalt.err (!%p493_p7)
}
 0x1d9   :  { %s500_s30 = smov 128   ;;  %s501_s4 = smov 8  }
 0x1da   :  { %365 = dma.vmem_to_hbm [thread:$0]  %s360_s21, 1536, %s624_s3, [#allocation3], %s500_s30, %s500_s30, %s501_s4  }
 0x1db   :  { %497 = dma.done.wait [#allocation3], 1536  }
 0x1dc   :  { %498 = vsyncadd [#allocation3], 4294965760 }
 0x1dd   :  { %369 = vsyncpa [#allocation3], 1 }

</bundles_post_ra>
